<compile_context>
chip_gen: v6e
topology: v6e:2x2x1
jax: 0.10.0
libtpu: 0.0.40
codegen_flags: <defaults>
</compile_context>

<pallas_src>
import numpy as np
import jax
import jax.numpy as jnp
from jax.experimental import pallas as pl
from jax.experimental.pallas import tpu as pltpu


def generate_state_space(hierarchy, total_nodes, levels):
    """NumPy mirror of TreeLoss.generateStateSpace (deterministic parameter setup)."""
    state = np.zeros((total_nodes + 1, total_nodes), dtype=np.float32)
    recorded = np.zeros(total_nodes, dtype=np.int32)
    i = 1
    if levels == 2:
        for path in hierarchy:
            if recorded[path[1]] == 0:
                state[i, path[1]] = 1
                recorded[path[1]] = 1
                i += 1
            state[i, path[1]] = 1
            state[i, path[0]] = 1
            i += 1
    elif levels == 3:
        for path in hierarchy:
            if recorded[path[1]] == 0:
                state[i, path[1]] = 1
                recorded[path[1]] = 1
                i += 1
            if recorded[path[2]] == 0:
                state[i, path[1]] = 1
                state[i, path[2]] = 1
                recorded[path[2]] = 1
                i += 1
            state[i, path[1]] = 1
            state[i, path[2]] = 1
            state[i, path[0]] = 1
            i += 1
    assert i == total_nodes + 1, "Invalid StateSpace!!!"
    return state


def tree_loss_kernel(state_ref, fs_ref, sel_ref, loss_ref):
    # state_ref : (S, N_pad)  bfloat16  binary state-space matrix (grid-resident)
    # fs_ref    : (TB, N_pad) bfloat16  this batch block of fs (natural layout)
    # sel_ref   : (S, TB)     bfloat16  sel[s, i] = stateSpace[s, labels[i]]  (0/1)
    # loss_ref  : (1, TB)     float32   per-column loss for this block
    #
    # NT contraction (batch lives on the sublanes of fs_ref and the lanes of the result).
    index = jax.lax.dot_general(
        state_ref[...], fs_ref[...],
        (((1,), (1,)), ((), ())),
        preferred_element_type=jnp.float32)                           # (S, TB) f32

    # log z  =  logsumexp over all rows (its own max).
    m_all = jnp.max(index, axis=0, keepdims=True)                     # (1, TB)
    lse_all = m_all + jnp.log(
        jnp.sum(jnp.exp(index - m_all), axis=0, keepdims=True))       # (1, TB)

    # log marginal  =  logsumexp over the selected rows, with its OWN max so a large
    # gap between the global max and the best selected row cannot underflow in f32.
    idx_sel = jnp.where(sel_ref[...] == 0, -jnp.inf, index)           # (S, TB)
    m_sel = jnp.max(idx_sel, axis=0, keepdims=True)                   # (1, TB)
    lse_sel = m_sel + jnp.log(
        jnp.sum(jnp.exp(idx_sel - m_sel), axis=0, keepdims=True))     # (1, TB)

    # loss = -log(marginal / z) = log z - log marginal
    loss_ref[...] = lse_all - lse_sel


def tree_loss(state_space, fs, labels, *, block_b=512):
    """Wrapper: pad/cast operands, gather sel columns, run the batch-tiled kernel."""
    S, N = state_space.shape
    B = fs.shape[0]

    n_pad = ((N + 127) // 128) * 128                                  # contraction pad
    b128 = ((B + 127) // 128) * 128
    tb = min(block_b, b128)                                           # lane block (mult of 128)
    b_pad = ((b128 + tb - 1) // tb) * tb
    n_blocks = b_pad // tb

    # stateSpace / fs are cast to bf16 (stateSpace is {0,1} so exact); f32 MXU accumulate.
    state_bf16 = jnp.zeros((S, n_pad), jnp.bfloat16).at[:, :N].set(
        state_space.astype(jnp.bfloat16))                             # (S, N_pad)
    fs_p = jnp.zeros((b_pad, n_pad), jnp.bfloat16).at[:B, :N].set(
        fs.astype(jnp.bfloat16))                                      # (B_pad, N_pad)

    # sel[s, i] = stateSpace[s, labels[i]]  — a column gather, done once on the host/XLA
    # side instead of an extra S*N*B one-hot matmul inside the kernel.
    lbl = jnp.clip(labels.astype(jnp.int32), 0, N - 1)
    sel = jnp.take(state_space, lbl, axis=1).astype(jnp.bfloat16)     # (S, B)
    sel_p = jnp.zeros((S, b_pad), jnp.bfloat16).at[:, :B].set(sel)    # (S, B_pad)

    cost = pl.CostEstimate(
        flops=2 * S * n_pad * b_pad,
        transcendentals=2 * S * b_pad,
        bytes_accessed=(S * n_pad * 2 + b_pad * n_pad * 2
                        + S * b_pad * 2 + b_pad * 4),
    )

    out = pl.pallas_call(
        tree_loss_kernel,
        out_shape=jax.ShapeDtypeStruct((1, b_pad), jnp.float32),
        grid_spec=pltpu.PrefetchScalarGridSpec(
            num_scalar_prefetch=0,
            grid=(n_blocks,),
            in_specs=[
                pl.BlockSpec((S, n_pad), lambda i: (0, 0)),    # stateSpace (resident)
                pl.BlockSpec((tb, n_pad), lambda i: (i, 0)),   # fs batch block
                pl.BlockSpec((S, tb), lambda i: (0, i)),       # sel batch block
            ],
            out_specs=pl.BlockSpec((1, tb), lambda i: (0, i)),
        ),
        compiler_params=pltpu.CompilerParams(
            dimension_semantics=("parallel",)),
        cost_estimate=cost,
    )(state_bf16, fs_p, sel_p)

    # Mean over the real (unpadded) batch columns only; padded columns are sliced
    # off (never multiplied), so any inf/nan there cannot leak into the mean.
    return jnp.mean(out[0, :B])


def tree_loss_reference(state_space, fs, labels, matmul_dtype=jnp.float32):
    """Pure-JAX reference mirroring the PyTorch forward.

    matmul_dtype=bfloat16 matches the kernel's MXU input precision;
    float32 gives the 'full precision' reference for a looser check.
    """
    a = state_space.astype(matmul_dtype)
    b = fs.astype(matmul_dtype)
    index = jax.lax.dot_general(a, b, (((1,), (1,)), ((), ())),
                                preferred_element_type=jnp.float32)   # (S, B)
    joint = jnp.exp(index)
    z = jnp.sum(joint, axis=0)
    onehot = jax.nn.one_hot(labels, fs.shape[1], dtype=jnp.float32)
    mask = (state_space @ onehot.T) > 0
    marginal = jnp.sum(jnp.where(mask, joint, 0.0), axis=0)
    return jnp.mean(-jnp.log(marginal / z))


def _check(state_space, fs, labels, *, block_b):
    loss = jax.block_until_ready(tree_loss(state_space, fs, labels, block_b=block_b))
    ref_bf16 = tree_loss_reference(state_space, fs, labels, matmul_dtype=jnp.bfloat16)
    ref_f32 = tree_loss_reference(state_space, fs, labels, matmul_dtype=jnp.float32)
    # Tight check against a precision-matched (bf16-operand, f32-accumulate) reference,
    # loose check against the full-f32 reference (bf16 rounding of fs only).
    assert np.allclose(np.asarray(loss), np.asarray(ref_bf16), rtol=1e-4, atol=1e-4), (
        loss, ref_bf16)
    assert np.allclose(np.asarray(loss), np.asarray(ref_f32), rtol=5e-2, atol=5e-2), (
        loss, ref_f32)
    return loss


if __name__ == "__main__":
    # Small 2-level hierarchy: 8 fine classes (0..7), 2 coarse classes (8, 9).
    hierarchy = [(f, 8 if f < 4 else 9) for f in range(8)]
    total_nodes = 10   # 8 fine + 2 coarse
    levels = 2
    state_space = jnp.asarray(generate_state_space(hierarchy, total_nodes, levels))

    key = jax.random.PRNGKey(0)
    k_fs1, k_lb1, k_fs2, k_lb2 = jax.random.split(key, 4)
    N = total_nodes

    # Case 1: tiny batch (single grid block).
    B1 = 4
    fs1 = jax.random.normal(k_fs1, (B1, N), dtype=jnp.float32)
    labels1 = jax.random.randint(k_lb1, (B1,), 0, 8)
    _check(state_space, fs1, labels1, block_b=512)

    # Case 2: larger-than-one-block batch (exercises the batch grid, 2 parallel blocks).
    B2 = 200
    fs2 = jax.random.normal(k_fs2, (B2, N), dtype=jnp.float32)
    labels2 = jax.random.randint(k_lb2, (B2,), 0, 8)
    _check(state_space, fs2, labels2, block_b=128)

    print("KERNEL_OK")
</pallas_src>

<mosaic_0001>
module attributes {stable_mosaic.version = 11 : i64} {
  func.func @tree_loss_kernel(%arg0: i32, %arg1: memref<11x128xbf16, #tpu.memory_space<vmem>>, %arg2: memref<128x128xbf16, #tpu.memory_space<vmem>>, %arg3: memref<11x128xbf16, #tpu.memory_space<vmem>>, %arg4: memref<1x128xf32, #tpu.memory_space<vmem>>) attributes {dimension_semantics = [#tpu.dimension_semantics<parallel>], iteration_bounds = array<i64: 1>, scalar_prefetch = 0 : i64, scratch_operands = 0 : i64, tpu.core_type = #tpu.core_type<tc>, window_params = [{pipeline_mode = #tpu.pipeline_mode<synchronous>, transform_indices = @transform_0, window_bounds = array<i64: 11, 128>}, {transform_indices = @transform_1, window_bounds = array<i64: 128, 128>}, {transform_indices = @transform_2, window_bounds = array<i64: 11, 128>}, {transform_indices = @transform_3, window_bounds = array<i64: 1, 128>}]} {
    %c0 = arith.constant 0 : index
    %c0_0 = arith.constant 0 : index
    %0 = vector.load %arg1[%c0, %c0_0] : memref<11x128xbf16, #tpu.memory_space<vmem>>, vector<11x128xbf16>
    %c0_1 = arith.constant 0 : index
    %c0_2 = arith.constant 0 : index
    %1 = vector.load %arg2[%c0_1, %c0_2] : memref<128x128xbf16, #tpu.memory_space<vmem>>, vector<128x128xbf16>
    %cst = arith.constant dense<0.000000e+00> : vector<11x128xf32>
    %2 = tpu.matmul %0, %1, %cst {dimension_numbers = #tpu.dot_dimension_numbers<[1], [1], [0], [0], [0, 0, 1, 0], [], []>} : vector<11x128xbf16>, vector<128x128xbf16>, vector<11x128xf32> -> vector<11x128xf32>
    %cst_3 = arith.constant dense<0xFF800000> : vector<128xf32>
    %3 = vector.multi_reduction <maximumf>, %2, %cst_3 [0] : vector<11x128xf32> to vector<128xf32>
    %4 = vector.shape_cast %3 : vector<128xf32> to vector<1x128xf32>
    %5 = vector.broadcast %4 : vector<1x128xf32> to vector<11x128xf32>
    %6 = arith.subf %2, %5 : vector<11x128xf32>
    %7 = math.exp %6 : vector<11x128xf32>
    %cst_4 = arith.constant dense<0.000000e+00> : vector<128xf32>
    %8 = vector.multi_reduction <add>, %7, %cst_4 [0] : vector<11x128xf32> to vector<128xf32>
    %9 = vector.shape_cast %8 : vector<128xf32> to vector<1x128xf32>
    %10 = math.log %9 : vector<1x128xf32>
    %11 = arith.addf %4, %10 : vector<1x128xf32>
    %c0_5 = arith.constant 0 : index
    %c0_6 = arith.constant 0 : index
    %12 = vector.load %arg3[%c0_5, %c0_6] : memref<11x128xbf16, #tpu.memory_space<vmem>>, vector<11x128xbf16>
    %cst_7 = arith.constant 0.000000e+00 : bf16
    %13 = vector.broadcast %cst_7 : bf16 to vector<11x128xbf16>
    %14 = arith.cmpf oeq, %12, %13 : vector<11x128xbf16>
    %cst_8 = arith.constant 0xFF800000 : f32
    %15 = vector.broadcast %cst_8 : f32 to vector<11x128xf32>
    %16 = arith.select %14, %15, %2 : vector<11x128xi1>, vector<11x128xf32>
    %cst_9 = arith.constant dense<0xFF800000> : vector<128xf32>
    %17 = vector.multi_reduction <maximumf>, %16, %cst_9 [0] : vector<11x128xf32> to vector<128xf32>
    %18 = vector.shape_cast %17 : vector<128xf32> to vector<1x128xf32>
    %19 = vector.broadcast %18 : vector<1x128xf32> to vector<11x128xf32>
    %20 = arith.subf %16, %19 : vector<11x128xf32>
    %21 = math.exp %20 : vector<11x128xf32>
    %cst_10 = arith.constant dense<0.000000e+00> : vector<128xf32>
    %22 = vector.multi_reduction <add>, %21, %cst_10 [0] : vector<11x128xf32> to vector<128xf32>
    %23 = vector.shape_cast %22 : vector<128xf32> to vector<1x128xf32>
    %24 = math.log %23 : vector<1x128xf32>
    %25 = arith.addf %18, %24 : vector<1x128xf32>
    %26 = arith.subf %11, %25 : vector<1x128xf32>
    %c0_11 = arith.constant 0 : index
    %c0_12 = arith.constant 0 : index
    %27 = vector.load %arg4[%c0_11, %c0_12] : memref<1x128xf32, #tpu.memory_space<vmem>>, vector<1x128xf32>
    tpu.vector_store %arg4[%c0_11, %c0_12], %26 {strides = array<i32>} : memref<1x128xf32, #tpu.memory_space<vmem>>, vector<1x128xf32>,
    return
  }
  func.func @transform_0(%arg0: i32) -> (i32, i32) {
    %c0_i32 = arith.constant 0 : i32
    %c0_i32_0 = arith.constant 0 : i32
    %c0_i32_1 = arith.constant 0 : i32
    return %c0_i32, %c0_i32_0 : i32, i32
  }
  func.func @transform_1(%arg0: i32) -> (i32, i32) {
    %c0_i32 = arith.constant 0 : i32
    %c0_i32_0 = arith.constant 0 : i32
    return %arg0, %c0_i32 : i32, i32
  }
  func.func @transform_2(%arg0: i32) -> (i32, i32) {
    %c0_i32 = arith.constant 0 : i32
    %c0_i32_0 = arith.constant 0 : i32
    return %c0_i32, %arg0 : i32, i32
  }
  func.func @transform_3(%arg0: i32) -> (i32, i32) {
    %c0_i32 = arith.constant 0 : i32
    %c0_i32_0 = arith.constant 0 : i32
    return %c0_i32, %arg0 : i32, i32
  }
}

</mosaic_0001>

<bundles_post_ra>
// kernel: tpu_custom_call.1
= control target key start
LH: loop header
LB: loop body
LE: loop exit
PB: predicated region body
PF: predicated region fallthrough
CT: control target
= control target key end

     0   :  { %8 = vsyncpa [#allocation3], 0  ;;  %s452_s0 = inlined_call_operand.hbm [shape: bf16[11,128], index: 0, kind: input, shape index: {}]   ;;  %s453_s1 = inlined_call_operand.hbm [shape: bf16[128,128], index: 1, kind: input, shape index: {}]   ;;  %s454_s2 = inlined_call_operand.hbm [shape: bf16[11,128], index: 2, kind: input, shape index: {}]   ;;  %s455_s3 = inlined_call_operand.hbm [shape: f32[1,128], index: 3, kind: output, shape index: {}]  }
   0x1   :  { %9 = vsyncpa [#allocation6], 0 }
   0x2   :  { %10 = vsyncpa [#allocation4], 0  ;;  %s407_s12 = smov [#allocation5]   ;;  %s408_s14 = smov [#allocation2]  }
   0x3   :  { %s28_s13 = sshll.u32 %s407_s12, 4  ;;  %s16_s15 = sshll.u32 %s408_s14, 4  ;;  %s29_s13 = int_to_ptr.vmem [resolvable:$true] %s28_s13  ;;  %s17_s15 = int_to_ptr.vmem [resolvable:$true] %s16_s15 }
   0x4   :  { %s329_s16 = scalar_lea.vmem %s29_s13, 1024  ;;  %p334_p1 = scmp.lt.s32.totalorder %s29_s13, %s29_s13 }
   0x5   :  { %p330_p0 = scmp.ne.s32.totalorder %s29_s13, %s329_s16  ;;  %p335_p2 = scmp.lt.s32.totalorder %s329_s16, %s329_s16 }
   0x7   :  { %p336_p3 = por %p335_p2, %p334_p1 }
   0x9   :  { %p337_p4 = pnand %p336_p3, %p330_p0 }
   0xb   :  { %340 = shalt.err (!%p337_p4)
}
   0xc   :  { %s409_s17 = smov 64   ;;  %s410_s18 = smov 4  }
   0xd   :  { %34 = dma.hbm_to_vmem [thread:$0]  %s453_s1, 1024, %s29_s13, [#allocation6], %s409_s17, %s409_s17, %s410_s18  }
   0xe   :  { %s349_s21 = scalar_lea.vmem %s17_s15, 128  ;;  %p354_p6 = scmp.lt.s32.totalorder %s17_s15, %s17_s15 }
   0xf   :  { %p350_p5 = scmp.ne.s32.totalorder %s17_s15, %s349_s21  ;;  %p355_p7 = scmp.lt.s32.totalorder %s349_s21, %s349_s21 }
  0x11   :  { %p356_p8 = por %p355_p7, %p354_p6 }
  0x13   :  { %p357_p9 = pnand %p356_p8, %p350_p5 }
  0x15   :  { %360 = shalt.err (!%p357_p9)
}
  0x16   :  { %22 = dma.hbm_to_vmem [thread:$0]  %s452_s0, 128, %s17_s15, [#allocation3], %s409_s17, %s409_s17, %s410_s18  }
  0x17   :  { %s411_s24 = smov [#allocation7]  }
  0x18   :  { %s40_s25 = sshll.u32 %s411_s24, 4  ;;  %s41_s25 = int_to_ptr.vmem [resolvable:$true] %s40_s25 }
  0x19   :  { %s369_s26 = scalar_lea.vmem %s41_s25, 128  ;;  %p374_p11 = scmp.lt.s32.totalorder %s41_s25, %s41_s25 }
  0x1a   :  { %p370_p10 = scmp.ne.s32.totalorder %s41_s25, %s369_s26  ;;  %p375_p12 = scmp.lt.s32.totalorder %s369_s26, %s369_s26 }
  0x1c   :  { %p376_p13 = por %p375_p12, %p374_p11 }
  0x1e   :  { %p377_p0 = pnand %p376_p13, %p370_p10 }
  0x20   :  { %380 = shalt.err (!%p377_p0)
}
  0x21   :  { %46 = dma.hbm_to_vmem [thread:$0]  %s454_s2, 128, %s41_s25, [#allocation6], %s409_s17, %s409_s17, %s410_s18  }
  0x22   :  { %401 = dma.done.wait [#allocation3], 128  }
  0x23   :  { %402 = vsyncadd [#allocation3], 4294967168 }
  0x24   :  { %403 = dma.done.wait [#allocation6], 1152  }
  0x25   :  { %404 = vsyncadd [#allocation6], 4294966144  ;;  %v412_v0 = vmov 0.0   ;;  %vm413_vm0 = vmmov 0   ;;  %v300_v1 = vld [vmem:[#allocation5 + $0x38] sm:$0xff]   ;;  %v301_v2 = vld [vmem:[#allocation5 + $0x30] sm:$0xff]  }
  0x26   :  { %271 = vmatprep.subr.bf16.mxu0 %v412_v0  ;;  %287 = vmatprep.mubr.msk.bf16.mxu0 %vm413_vm0, %v412_v0  ;;  %v302_v3 = vld [vmem:[#allocation5 + $0x28] sm:$0xff]   ;;  %v303_v4 = vld [vmem:[#allocation5 + $0x20] sm:$0xff]   ;;  %v304_v5 = vld [vmem:[#allocation5 + $0x18] sm:$0xff]   ;;  %v414_v12 = vmov 0   ;;  %vm172_vm3 = vcmask 1042432   ;;  %s415_s0 = smov [#allocation8]  }
  0x27   :  { %272 = vmatpush3.bf16.xpose.msra.mxu0 %v300_v1  ;;  %v305_v6 = vld [vmem:[#allocation5 + $0x10] sm:$0xff]   ;;  %v306_v7 = vld [vmem:[#allocation5 + $0x8] sm:$0xff]   ;;  %v307_v8 = vld [vmem:[#allocation5] sm:$0xff]   ;;  %s243_s2 = sshll.u32 %s415_s0, 4  ;;  %s244_s2 = int_to_ptr.vmem [resolvable:$true] %s243_s2 }
  0x28   :  { %273 = vmatprep.subr.bf16.mxu0 %v412_v0  ;;  %v308_v9 = vld [vmem:[#allocation2] sm:$0x3f]   ;;  %v199_v10 = vld [vmem:[#allocation7 + $0x4] sm:$0x3]  ;;  %v198_v11 = vld [vmem:[#allocation7] sm:$0xf]  ;;  %p386_p2 = scmp.lt.s32.totalorder %s244_s2, %s244_s2 }
  0x29   :  { %vm201_vm1 = vcmp.eq.bf16.partialorder %v199_v10, 0  ;;  %vm200_vm2 = vcmp.eq.bf16.partialorder %v198_v11, 0  ;;  %s381_s28 = scalar_lea.vmem %s244_s2, 16  ;;  %s385_s29 = scalar_lea.vmem %s244_s2, 32 }
  0x2a   :  { %v203_v13 = vsel %vm201_vm1, 65537, %v414_v12  ;;  %v202_v14 = vsel %vm200_vm2, 65537, %v414_v12  ;;  %p382_p1 = scmp.ne.s32.totalorder %s244_s2, %s381_s28  ;;  %p387_p3 = scmp.lt.s32.totalorder %s385_s29, %s381_s28 }
  0x2b   :  { %v205_v15 = vunpack.c.l.b16 %v203_v13  ;;  %v204_v16 = vunpack.c.l.b16 %v202_v14 }
  0x2c   :  { %p388_p4 = por %p387_p3, %p386_p2 }
  0x2d   :  { %vm207_vm4 = vcmp.ne.s32.totalorder %v205_v15, 0  ;;  %vm206_vm5 = vcmp.ne.s32.totalorder %v204_v16, 0 }
  0x2e   :  { %p389_p5 = pnand %p388_p4, %p382_p1 }
  0x2f   :  { %274 = vmatpush3.bf16.xpose.msra.mxu0 %v301_v2 }
  0x30   :  { %275 = vmatprep.subr.bf16.mxu0 %v412_v0 }
  0x37   :  { %276 = vmatpush3.bf16.xpose.msra.mxu0 %v302_v3 }
  0x38   :  { %277 = vmatprep.subr.bf16.mxu0 %v412_v0 }
  0x3f   :  { %278 = vmatpush3.bf16.xpose.msra.mxu0 %v303_v4 }
  0x40   :  { %279 = vmatprep.subr.bf16.mxu0 %v412_v0 }
  0x47   :  { %280 = vmatpush3.bf16.xpose.msra.mxu0 %v304_v5 }
  0x48   :  { %281 = vmatprep.subr.bf16.mxu0 %v412_v0 }
  0x4f   :  { %282 = vmatpush3.bf16.xpose.msra.mxu0 %v305_v6 }
  0x50   :  { %283 = vmatprep.subr.bf16.mxu0 %v412_v0 }
  0x57   :  { %284 = vmatpush3.bf16.xpose.msra.mxu0 %v306_v7 }
  0x58   :  { %285 = vmatprep.subr.bf16.mxu0 %v412_v0 }
  0x5f   :  { %286 = vmatpush3.bf16.xpose.msra.mxu0 %v307_v8 }
  0x66   :  { %288 = vmatmul.mubr.bf16.vlgmr.msra.gmra.mxu0 %v308_v9 }
 0x126   :  { %v165_v17 = vpop.f32.mrf.mxu0 }
 0x127   :  { %v208_v22 = vsel %vm206_vm5, -inf, %v165_v17 }
 0x128   :  { %v289_v18 = vpop.f32.mrf.mxu0 }
 0x12a   :  { %v168_v19 = vpop.f32.mrf.mxu0 }
 0x12b   :  { %v173_v20 = vsel %vm172_vm3, %v168_v19, -inf  ;;  %v209_v21 = vsel %vm207_vm4, -inf, %v168_v19 }
 0x12c   :  { %v174_v23 = vmax.f32 %v165_v17, %v173_v20  ;;  %v210_v24 = vsel %vm172_vm3, %v209_v21, -inf  ;;  %v290_v25 = vpop.f32.mrf.mxu0 }
 0x12d   :  { %v211_v26 = vmax.f32 %v208_v22, %v210_v24 }
 0x12e   :  { %v175_v27 = vrot.slane %v174_v23, 4 }
 0x12f   :  { %v212_v28 = vrot.slane %v211_v26, 4 }
 0x130   :  { %v176_v29 = vmax.f32 %v174_v23, %v175_v27 }
 0x131   :  { %v213_v30 = vmax.f32 %v211_v26, %v212_v28 }
 0x132   :  { %v177_v31 = vrot.slane %v176_v29, 2 }
 0x133   :  { %v214_v32 = vrot.slane %v213_v30, 2 }
 0x134   :  { %v178_v33 = vmax.f32 %v176_v29, %v177_v31 }
 0x135   :  { %v215_v34 = vmax.f32 %v213_v30, %v214_v32 }
 0x136   :  { %v179_v35 = vrot.slane %v178_v33, 1 }
 0x137   :  { %v216_v36 = vrot.slane %v215_v34, 1 }
 0x138   :  { %v180_v37 = vmax.f32 %v178_v33, %v179_v35 }
 0x139   :  { %v217_v38 = vmax.f32 %v215_v34, %v216_v36 }
 0x13a   :  { %v181_v39 = vsub.f32 %v165_v17, %v180_v37  ;;  %v182_v40 = vsub.f32 %v168_v19, %v180_v37 }
 0x13b   :  { %v218_v41 = vsub.f32 %v208_v22, %v217_v38  ;;  %v219_v42 = vsub.f32 %v209_v21, %v217_v38 }
 0x13c   :  { %v183_v43 = vmul.f32 1.442695, %v181_v39  ;;  %v185_v44 = vmul.f32 1.442695, %v182_v40 }
 0x13d   :  { %v220_v45 = vmul.f32 1.442695, %v218_v41  ;;  %v222_v46 = vmul.f32 1.442695, %v219_v42 }
 0x13e   :  { %309 = vpow2.f32 %v183_v43 }
 0x13f   :  { %311 = vpow2.f32 %v185_v44 }
 0x140   :  { %313 = vpow2.f32 %v220_v45 }
 0x141   :  { %315 = vpow2.f32 %v222_v46 }
 0x14b   :  { %v310_v47 = vpop.eup %309 }
 0x14c   :  { %v312_v48 = vpop.eup %311 }
 0x14d   :  { %v314_v49 = vpop.eup %313  ;;  %v187_v50 = vsel %vm172_vm3, %v312_v48, 0.0 }
 0x14e   :  { %v316_v51 = vpop.eup %315  ;;  %v188_v52 = vadd.f32 %v310_v47, %v187_v50 }
 0x14f   :  { %v224_v53 = vsel %vm172_vm3, %v316_v51, 0.0 }
 0x150   :  { %v189_v54 = vrot.slane %v188_v52, 4  ;;  %v225_v55 = vadd.f32 %v314_v49, %v224_v53 }
 0x152   :  { %v190_v56 = vadd.f32 %v189_v54, %v188_v52  ;;  %v226_v57 = vrot.slane %v225_v55, 4 }
 0x154   :  { %v227_v58 = vadd.f32 %v226_v57, %v225_v55  ;;  %v191_v59 = vrot.slane %v190_v56, 2 }
 0x156   :  { %v192_v60 = vadd.f32 %v191_v59, %v190_v56  ;;  %v228_v61 = vrot.slane %v227_v58, 2 }
 0x158   :  { %v193_v62 = vrot.slane %v192_v60, 1  ;;  %v229_v63 = vadd.f32 %v228_v61, %v227_v58 }
 0x15a   :  { %v194_v0 = vadd.f32 %v193_v62, %v192_v60  ;;  %v230_v1 = vrot.slane %v229_v63, 1 }
 0x15c   :  { %317 = vlog2.f32 %v194_v0  ;;  %v231_v2 = vadd.f32 %v230_v1, %v229_v63 }
 0x15e   :  { %319 = vlog2.f32 %v231_v2 }
 0x169   :  { %v318_v3 = vpop.eup %317 }
 0x16a   :  { %v196_v4 = vmul.f32 0.6931472, %v318_v3 }
 0x16b   :  { %v320_v5 = vpop.eup %319 }
 0x16c   :  { %v197_v6 = vadd.f32 %v196_v4, %v180_v37  ;;  %v233_v7 = vmul.f32 0.6931472, %v320_v5 }
 0x16e   :  { %v234_v8 = vadd.f32 %v233_v7, %v217_v38 }
 0x170   :  { %v235_v9 = vsub.f32 %v197_v6, %v234_v8 }
 0x172   :  { %236 = vst [vmem:[#allocation8] sm:$0x1] %v235_v9 }
 0x173   :  { %392 = shalt.err (!%p389_p5)
}
 0x174   :  { %246 = dma.vmem_to_hbm [thread:$0]  %s244_s2, 16, %s455_s3, [#allocation4]  }
 0x175   :  { %405 = dma.done.wait [#allocation4], 16  }
 0x176   :  { %406 = vsyncadd [#allocation4], 4294967280 }
 0x177   :  { %250 = vsyncpa [#allocation3], 1 }
 0x178   :  { %251 = vsyncpa [#allocation6], 1 }
 0x179   :  { %252 = vsyncpa [#allocation4], 1 }

</bundles_post_ra>
